<compile_context>
chip_gen: v5e
topology: v5e:2x2
jax: 0.10.0
libtpu: 0.0.40
codegen_flags: <defaults>
</compile_context>

<pallas_src>
import functools

import jax
import jax.numpy as jnp
from jax.experimental import pallas as pl
from jax.experimental.pallas import tpu as pltpu


def _erf_approx(x):
    # Abramowitz & Stegun 7.1.26 (max abs err ~1.5e-7 in exact arithmetic).
    # exp and the approximate reciprocal run on the EUP (free slot relative to
    # the VALU); the sign is re-applied with a bit-level copysign.
    a1, a2, a3, a4, a5 = (0.254829592, -0.284496736, 1.421413741,
                          -1.453152027, 1.061405429)
    p = 0.3275911
    ax = jnp.abs(x)
    t = pl.reciprocal(1.0 + p * ax, approx=True)
    poly = ((((a5 * t + a4) * t + a3) * t + a2) * t + a1) * t
    mag = 1.0 - poly * jnp.exp(-ax * ax)          # erf(|x|), non-negative
    sign_bit = pltpu.bitcast(x, jnp.uint32) & jnp.uint32(0x80000000)
    return pltpu.bitcast(pltpu.bitcast(mag, jnp.uint32) | sign_bit,
                         jnp.float32)


def _gelu_exact(z):
    # PyTorch F.gelu default (erf-based): 0.5 * z * (1 + erf(z / sqrt(2)))
    return 0.5 * z * (1.0 + _erf_approx(z * 0.7071067811865476))


def common_block_kernel(mask_ref, x_ref, w1_ref, b1_ref, w2_ref, b2_ref,
                        out_ref, *, Cp, H, W):
    # mask_ref: (9, HW)      f32   per-tap zero-padding validity (VMEM-resident)
    # x_ref   : (Cp, HW)     f32   one whole image, channels on sublanes
    # w1_ref  : (Cp, 9*Cp)   bf16  conv1 weights, BN1 scale folded, tap-major K
    # b1_ref  : (Cp, 1)      f32   folded BN1 bias
    # w2_ref  : (Cp, 9*Cp)   bf16  conv2 weights, BN2 scale folded
    # b2_ref  : (Cp, 1)      f32   folded BN2 bias
    # out_ref : (Cp, HW)     f32
    HW = H * W
    x = x_ref[...]                                       # (Cp, HW) f32
    m = mask_ref[...]                                    # (9, HW)  f32

    taps = [(dy, dx) for dy in (-1, 0, 1) for dx in (-1, 0, 1)]
    # Hoist the (1, HW) -> (Cp, HW) mask broadcasts: done once, reused by both
    # convolutions.  Center tap needs no mask.
    mfull = [None if (dy == 0 and dx == 0)
             else jnp.broadcast_to(m[t:t + 1, :], (Cp, HW))
             for t, (dy, dx) in enumerate(taps)]

    def stack_taps(a):
        # Build the stacked activation (9*Cp, HW) bf16: block t is the
        # cyclically lane-rolled input for tap t with out-of-image lanes
        # zeroed (reproduces padding=1).  Rolls go through the XLU; the mask
        # multiply stays f32 on the VPU; only the MXU operand is bf16.
        parts = []
        for t, (dy, dx) in enumerate(taps):
            s = (-(dy * W + dx)) % HW
            r = a if s == 0 else pltpu.roll(a, shift=s, axis=1)
            if mfull[t] is not None:
                r = r * mfull[t]
            parts.append(r.astype(jnp.bfloat16))
        return jnp.concatenate(parts, axis=0)            # (9*Cp, HW)

    # conv1 (BN1 scale folded): single MXU matmul with K = 9*Cp, + bias, ReLU.
    y = jnp.dot(w1_ref[...], stack_taps(x), preferred_element_type=jnp.float32)
    y = jnp.maximum(y + b1_ref[...], 0.0)
    # conv2 (BN2 folded) + bias + residual + exact (erf-based) GELU.
    z = jnp.dot(w2_ref[...], stack_taps(y), preferred_element_type=jnp.float32)
    out_ref[...] = _gelu_exact(z + b2_ref[...] + x)


@jax.jit
def common_block(x, w1, gamma1, beta1, mean1, var1,
                 w2, gamma2, beta2, mean2, var2):
    eps = 1e-5
    N, C, H, W = x.shape
    cout = w1.shape[0]
    assert cout == C and w1.shape[1] == C and w2.shape[:2] == (cout, cout), (
        "CommonBlock residual add requires in_channel == out_channel")

    HW = H * W
    # Pad channels to a multiple of 16: bf16 sublane packing for the MXU
    # operands (also satisfies the f32 sublane multiple of 8).
    Cp = max(16, -(-C // 16) * 16)

    # Fold BN running stats (inference semantics): scale into the conv
    # weights, bias stays as a per-channel add.
    s1 = gamma1 / jnp.sqrt(var1 + eps)
    b1 = beta1 - mean1 * s1
    s2 = gamma2 / jnp.sqrt(var2 + eps)
    b2 = beta2 - mean2 * s2

    def stack_w(w, s):
        wf = w * s[:, None, None, None]
        wp = jnp.pad(wf, ((0, Cp - C), (0, Cp - C), (0, 0), (0, 0)))
        # (O, I, 3, 3) -> (O, ky, kx, I) -> (O, 9*I): tap-major inner blocks so
        # one jnp.dot contracts over all 9 taps and all input channels.
        return jnp.transpose(wp, (0, 2, 3, 1)).reshape(Cp, 9 * Cp).astype(
            jnp.bfloat16)

    w1s = stack_w(w1, s1)
    w2s = stack_w(w2, s2)
    b1p = jnp.pad(b1, (0, Cp - C))[:, None].astype(jnp.float32)
    b2p = jnp.pad(b2, (0, Cp - C))[:, None].astype(jnp.float32)

    # Per-tap zero-padding validity masks (identical for every image).
    pos = jnp.arange(HW, dtype=jnp.int32)
    hh, ww = pos // W, pos % W
    mask = jnp.stack([((hh + dy >= 0) & (hh + dy < H) &
                       (ww + dx >= 0) & (ww + dx < W)).astype(jnp.float32)
                      for dy in (-1, 0, 1) for dx in (-1, 0, 1)])   # (9, HW)

    # (N, C, H, W) -> (Cp, N*H*W): channels on sublanes, batch+spatial packed
    # lane-dense; each image occupies a contiguous, image-aligned lane block.
    xp = jnp.pad(x, ((0, 0), (0, Cp - C), (0, 0), (0, 0)))
    xp = jnp.transpose(xp, (1, 0, 2, 3)).reshape(Cp, N * HW)

    kernel = functools.partial(common_block_kernel, Cp=Cp, H=H, W=W)
    out = pl.pallas_call(
        kernel,
        out_shape=jax.ShapeDtypeStruct((Cp, N * HW), jnp.float32),
        grid=(N,),                                  # one whole image per step
        in_specs=[
            pl.BlockSpec((9, HW), lambda n: (0, 0)),        # masks (resident)
            pl.BlockSpec((Cp, HW), lambda n: (0, n)),       # image n
            pl.BlockSpec((Cp, 9 * Cp), lambda n: (0, 0)),   # w1 (resident)
            pl.BlockSpec((Cp, 1), lambda n: (0, 0)),        # b1
            pl.BlockSpec((Cp, 9 * Cp), lambda n: (0, 0)),   # w2 (resident)
            pl.BlockSpec((Cp, 1), lambda n: (0, 0)),        # b2
        ],
        out_specs=pl.BlockSpec((Cp, HW), lambda n: (0, n)),
        compiler_params=pltpu.CompilerParams(
            # Independent images: shard the grid across both v7x TensorCores.
            dimension_semantics=("parallel",),
            vmem_limit_bytes=32 * 1024 * 1024),
    )(mask, xp, w1s, b1p, w2s, b2p)

    # (Cp, N*H*W) -> (N, C, H, W); pure wrapper-side layout plumbing.
    return jnp.transpose(out[:C].reshape(C, N, H, W), (1, 0, 2, 3))


def _reference(x, w1, gamma1, beta1, mean1, var1,
               w2, gamma2, beta2, mean2, var2, eps=1e-5):
    def conv(a, w):
        return jax.lax.conv_general_dilated(
            a, w, window_strides=(1, 1), padding=((1, 1), (1, 1)),
            dimension_numbers=("NCHW", "OIHW", "NCHW"),
            precision=jax.lax.Precision.HIGHEST)

    def bn(a, g, b, m, v):
        g = g[None, :, None, None]; b = b[None, :, None, None]
        m = m[None, :, None, None]; v = v[None, :, None, None]
        return (a - m) / jnp.sqrt(v + eps) * g + b

    y = jax.nn.relu(bn(conv(x, w1), gamma1, beta1, mean1, var1))
    y = bn(conv(y, w2), gamma2, beta2, mean2, var2)
    y = y + x
    return jax.nn.gelu(y, approximate=False)


if __name__ == "__main__":
    N, C, H, W = 2, 4, 16, 16   # in_channel == out_channel (residual add)
    key = jax.random.PRNGKey(0)
    ks = jax.random.split(key, 12)

    x = jax.random.normal(ks[0], (N, C, H, W), jnp.float32)

    w1 = jax.random.normal(ks[1], (C, C, 3, 3), jnp.float32) * 0.1
    gamma1 = jax.random.uniform(ks[2], (C,), jnp.float32, 0.5, 1.5)
    beta1 = jax.random.normal(ks[3], (C,), jnp.float32) * 0.1
    mean1 = jax.random.normal(ks[4], (C,), jnp.float32) * 0.1
    var1 = jax.random.uniform(ks[5], (C,), jnp.float32, 0.5, 1.5)

    w2 = jax.random.normal(ks[6], (C, C, 3, 3), jnp.float32) * 0.1
    gamma2 = jax.random.uniform(ks[7], (C,), jnp.float32, 0.5, 1.5)
    beta2 = jax.random.normal(ks[8], (C,), jnp.float32) * 0.1
    mean2 = jax.random.normal(ks[9], (C,), jnp.float32) * 0.1
    var2 = jax.random.uniform(ks[10], (C,), jnp.float32, 0.5, 1.5)

    out = common_block(x, w1, gamma1, beta1, mean1, var1,
                       w2, gamma2, beta2, mean2, var2)
    out = jax.block_until_ready(out)

    ref = _reference(x, w1, gamma1, beta1, mean1, var1,
                     w2, gamma2, beta2, mean2, var2)
    assert out.shape == (N, C, H, W)
    # 2e-2 tolerance: the deliberate bf16 MXU operands (vs the f32 HIGHEST
    # precision reference) dominate the error budget across two stacked convs;
    # the A&S erf polynomial and approximate reciprocal add ~1e-3.  Structural
    # bugs produce O(0.1+) errors.
    assert jnp.allclose(out, ref, atol=2e-2, rtol=2e-2), float(
        jnp.max(jnp.abs(out - ref)))

    print("KERNEL_OK")
</pallas_src>

<mosaic_0001>
module attributes {stable_mosaic.version = 11 : i64} {
  func.func @common_block_kernel(%arg0: i32, %arg1: memref<9x256xf32, #tpu.memory_space<vmem>>, %arg2: memref<16x256xf32, #tpu.memory_space<vmem>>, %arg3: memref<16x144xbf16, #tpu.memory_space<vmem>>, %arg4: memref<16x1xf32, #tpu.memory_space<vmem>>, %arg5: memref<16x144xbf16, #tpu.memory_space<vmem>>, %arg6: memref<16x1xf32, #tpu.memory_space<vmem>>, %arg7: memref<16x256xf32, #tpu.memory_space<vmem>>) attributes {dimension_semantics = [#tpu.dimension_semantics<parallel>], iteration_bounds = array<i64: 2>, scalar_prefetch = 0 : i64, scratch_operands = 0 : i64, tpu.core_type = #tpu.core_type<tc>, window_params = [{pipeline_mode = #tpu.pipeline_mode<synchronous>, transform_indices = @transform_0, window_bounds = array<i64: 9, 256>}, {transform_indices = @transform_1, window_bounds = array<i64: 16, 256>}, {pipeline_mode = #tpu.pipeline_mode<synchronous>, transform_indices = @transform_2, window_bounds = array<i64: 16, 144>}, {pipeline_mode = #tpu.pipeline_mode<synchronous>, transform_indices = @transform_3, window_bounds = array<i64: 16, 1>}, {pipeline_mode = #tpu.pipeline_mode<synchronous>, transform_indices = @transform_4, window_bounds = array<i64: 16, 144>}, {pipeline_mode = #tpu.pipeline_mode<synchronous>, transform_indices = @transform_5, window_bounds = array<i64: 16, 1>}, {transform_indices = @transform_6, window_bounds = array<i64: 16, 256>}]} {
    %c0 = arith.constant 0 : index
    %c0_0 = arith.constant 0 : index
    %0 = vector.load %arg2[%c0, %c0_0] : memref<16x256xf32, #tpu.memory_space<vmem>>, vector<16x256xf32>
    %c0_1 = arith.constant 0 : index
    %c0_2 = arith.constant 0 : index
    %1 = vector.load %arg1[%c0_1, %c0_2] : memref<9x256xf32, #tpu.memory_space<vmem>>, vector<9x256xf32>
    %2 = vector.extract_strided_slice %1 {offsets = [0, 0], sizes = [1, 256], strides = [1, 1]} : vector<9x256xf32> to vector<1x256xf32>
    %3 = vector.shape_cast %2 : vector<1x256xf32> to vector<1x256xf32>
    %4 = vector.broadcast %3 : vector<1x256xf32> to vector<16x256xf32>
    %5 = vector.extract_strided_slice %1 {offsets = [1, 0], sizes = [1, 256], strides = [1, 1]} : vector<9x256xf32> to vector<1x256xf32>
    %6 = vector.shape_cast %5 : vector<1x256xf32> to vector<1x256xf32>
    %7 = vector.broadcast %6 : vector<1x256xf32> to vector<16x256xf32>
    %8 = vector.extract_strided_slice %1 {offsets = [2, 0], sizes = [1, 256], strides = [1, 1]} : vector<9x256xf32> to vector<1x256xf32>
    %9 = vector.shape_cast %8 : vector<1x256xf32> to vector<1x256xf32>
    %10 = vector.broadcast %9 : vector<1x256xf32> to vector<16x256xf32>
    %11 = vector.extract_strided_slice %1 {offsets = [3, 0], sizes = [1, 256], strides = [1, 1]} : vector<9x256xf32> to vector<1x256xf32>
    %12 = vector.shape_cast %11 : vector<1x256xf32> to vector<1x256xf32>
    %13 = vector.broadcast %12 : vector<1x256xf32> to vector<16x256xf32>
    %14 = vector.extract_strided_slice %1 {offsets = [5, 0], sizes = [1, 256], strides = [1, 1]} : vector<9x256xf32> to vector<1x256xf32>
    %15 = vector.shape_cast %14 : vector<1x256xf32> to vector<1x256xf32>
    %16 = vector.broadcast %15 : vector<1x256xf32> to vector<16x256xf32>
    %17 = vector.extract_strided_slice %1 {offsets = [6, 0], sizes = [1, 256], strides = [1, 1]} : vector<9x256xf32> to vector<1x256xf32>
    %18 = vector.shape_cast %17 : vector<1x256xf32> to vector<1x256xf32>
    %19 = vector.broadcast %18 : vector<1x256xf32> to vector<16x256xf32>
    %20 = vector.extract_strided_slice %1 {offsets = [7, 0], sizes = [1, 256], strides = [1, 1]} : vector<9x256xf32> to vector<1x256xf32>
    %21 = vector.shape_cast %20 : vector<1x256xf32> to vector<1x256xf32>
    %22 = vector.broadcast %21 : vector<1x256xf32> to vector<16x256xf32>
    %23 = vector.extract_strided_slice %1 {offsets = [8, 0], sizes = [1, 256], strides = [1, 1]} : vector<9x256xf32> to vector<1x256xf32>
    %24 = vector.shape_cast %23 : vector<1x256xf32> to vector<1x256xf32>
    %25 = vector.broadcast %24 : vector<1x256xf32> to vector<16x256xf32>
    %c0_3 = arith.constant 0 : index
    %c0_4 = arith.constant 0 : index
    %26 = vector.load %arg3[%c0_3, %c0_4] : memref<16x144xbf16, #tpu.memory_space<vmem>>, vector<16x144xbf16>
    %c17_i32 = arith.constant 17 : i32
    %27 = tpu.dynamic_rotate %0 by %c17_i32 dim 1 : vector<16x256xf32>, i32 -> vector<16x256xf32>
    %28 = arith.mulf %27, %4 : vector<16x256xf32>
    %29 = arith.truncf %28 : vector<16x256xf32> to vector<16x256xbf16>
    %c16_i32 = arith.constant 16 : i32
    %30 = tpu.dynamic_rotate %0 by %c16_i32 dim 1 : vector<16x256xf32>, i32 -> vector<16x256xf32>
    %31 = arith.mulf %30, %7 : vector<16x256xf32>
    %32 = arith.truncf %31 : vector<16x256xf32> to vector<16x256xbf16>
    %c15_i32 = arith.constant 15 : i32
    %33 = tpu.dynamic_rotate %0 by %c15_i32 dim 1 : vector<16x256xf32>, i32 -> vector<16x256xf32>
    %34 = arith.mulf %33, %10 : vector<16x256xf32>
    %35 = arith.truncf %34 : vector<16x256xf32> to vector<16x256xbf16>
    %c1_i32 = arith.constant 1 : i32
    %36 = tpu.dynamic_rotate %0 by %c1_i32 dim 1 : vector<16x256xf32>, i32 -> vector<16x256xf32>
    %37 = arith.mulf %36, %13 : vector<16x256xf32>
    %38 = arith.truncf %37 : vector<16x256xf32> to vector<16x256xbf16>
    %39 = arith.truncf %0 : vector<16x256xf32> to vector<16x256xbf16>
    %c255_i32 = arith.constant 255 : i32
    %40 = tpu.dynamic_rotate %0 by %c255_i32 dim 1 : vector<16x256xf32>, i32 -> vector<16x256xf32>
    %41 = arith.mulf %40, %16 : vector<16x256xf32>
    %42 = arith.truncf %41 : vector<16x256xf32> to vector<16x256xbf16>
    %c241_i32 = arith.constant 241 : i32
    %43 = tpu.dynamic_rotate %0 by %c241_i32 dim 1 : vector<16x256xf32>, i32 -> vector<16x256xf32>
    %44 = arith.mulf %43, %19 : vector<16x256xf32>
    %45 = arith.truncf %44 : vector<16x256xf32> to vector<16x256xbf16>
    %c240_i32 = arith.constant 240 : i32
    %46 = tpu.dynamic_rotate %0 by %c240_i32 dim 1 : vector<16x256xf32>, i32 -> vector<16x256xf32>
    %47 = arith.mulf %46, %22 : vector<16x256xf32>
    %48 = arith.truncf %47 : vector<16x256xf32> to vector<16x256xbf16>
    %c239_i32 = arith.constant 239 : i32
    %49 = tpu.dynamic_rotate %0 by %c239_i32 dim 1 : vector<16x256xf32>, i32 -> vector<16x256xf32>
    %50 = arith.mulf %49, %25 : vector<16x256xf32>
    %51 = arith.truncf %50 : vector<16x256xf32> to vector<16x256xbf16>
    %52 = tpu.concatenate %29, %32, %35, %38, %39, %42, %45, %48, %51 in 0 : vector<16x256xbf16>, vector<16x256xbf16>, vector<16x256xbf16>, vector<16x256xbf16>, vector<16x256xbf16>, vector<16x256xbf16>, vector<16x256xbf16>, vector<16x256xbf16>, vector<16x256xbf16> -> vector<144x256xbf16>
    %cst = arith.constant dense<0.000000e+00> : vector<16x256xf32>
    %53 = tpu.matmul %26, %52, %cst {dimension_numbers = #tpu.dot_dimension_numbers<[1], [0], [0], [1], [0, 0, 1, 1], [], []>} : vector<16x144xbf16>, vector<144x256xbf16>, vector<16x256xf32> -> vector<16x256xf32>
    %c0_5 = arith.constant 0 : index
    %c0_6 = arith.constant 0 : index
    %54 = vector.load %arg4[%c0_5, %c0_6] : memref<16x1xf32, #tpu.memory_space<vmem>>, vector<16x1xf32>
    %55 = vector.broadcast %54 : vector<16x1xf32> to vector<16x256xf32>
    %56 = arith.addf %53, %55 : vector<16x256xf32>
    %cst_7 = arith.constant 0.000000e+00 : f32
    %57 = vector.broadcast %cst_7 : f32 to vector<16x256xf32>
    %58 = arith.maximumf %56, %57 : vector<16x256xf32>
    %c0_8 = arith.constant 0 : index
    %c0_9 = arith.constant 0 : index
    %59 = vector.load %arg5[%c0_8, %c0_9] : memref<16x144xbf16, #tpu.memory_space<vmem>>, vector<16x144xbf16>
    %c17_i32_10 = arith.constant 17 : i32
    %60 = tpu.dynamic_rotate %58 by %c17_i32_10 dim 1 : vector<16x256xf32>, i32 -> vector<16x256xf32>
    %61 = arith.mulf %60, %4 : vector<16x256xf32>
    %62 = arith.truncf %61 : vector<16x256xf32> to vector<16x256xbf16>
    %c16_i32_11 = arith.constant 16 : i32
    %63 = tpu.dynamic_rotate %58 by %c16_i32_11 dim 1 : vector<16x256xf32>, i32 -> vector<16x256xf32>
    %64 = arith.mulf %63, %7 : vector<16x256xf32>
    %65 = arith.truncf %64 : vector<16x256xf32> to vector<16x256xbf16>
    %c15_i32_12 = arith.constant 15 : i32
    %66 = tpu.dynamic_rotate %58 by %c15_i32_12 dim 1 : vector<16x256xf32>, i32 -> vector<16x256xf32>
    %67 = arith.mulf %66, %10 : vector<16x256xf32>
    %68 = arith.truncf %67 : vector<16x256xf32> to vector<16x256xbf16>
    %c1_i32_13 = arith.constant 1 : i32
    %69 = tpu.dynamic_rotate %58 by %c1_i32_13 dim 1 : vector<16x256xf32>, i32 -> vector<16x256xf32>
    %70 = arith.mulf %69, %13 : vector<16x256xf32>
    %71 = arith.truncf %70 : vector<16x256xf32> to vector<16x256xbf16>
    %72 = arith.truncf %58 : vector<16x256xf32> to vector<16x256xbf16>
    %c255_i32_14 = arith.constant 255 : i32
    %73 = tpu.dynamic_rotate %58 by %c255_i32_14 dim 1 : vector<16x256xf32>, i32 -> vector<16x256xf32>
    %74 = arith.mulf %73, %16 : vector<16x256xf32>
    %75 = arith.truncf %74 : vector<16x256xf32> to vector<16x256xbf16>
    %c241_i32_15 = arith.constant 241 : i32
    %76 = tpu.dynamic_rotate %58 by %c241_i32_15 dim 1 : vector<16x256xf32>, i32 -> vector<16x256xf32>
    %77 = arith.mulf %76, %19 : vector<16x256xf32>
    %78 = arith.truncf %77 : vector<16x256xf32> to vector<16x256xbf16>
    %c240_i32_16 = arith.constant 240 : i32
    %79 = tpu.dynamic_rotate %58 by %c240_i32_16 dim 1 : vector<16x256xf32>, i32 -> vector<16x256xf32>
    %80 = arith.mulf %79, %22 : vector<16x256xf32>
    %81 = arith.truncf %80 : vector<16x256xf32> to vector<16x256xbf16>
    %c239_i32_17 = arith.constant 239 : i32
    %82 = tpu.dynamic_rotate %58 by %c239_i32_17 dim 1 : vector<16x256xf32>, i32 -> vector<16x256xf32>
    %83 = arith.mulf %82, %25 : vector<16x256xf32>
    %84 = arith.truncf %83 : vector<16x256xf32> to vector<16x256xbf16>
    %85 = tpu.concatenate %62, %65, %68, %71, %72, %75, %78, %81, %84 in 0 : vector<16x256xbf16>, vector<16x256xbf16>, vector<16x256xbf16>, vector<16x256xbf16>, vector<16x256xbf16>, vector<16x256xbf16>, vector<16x256xbf16>, vector<16x256xbf16>, vector<16x256xbf16> -> vector<144x256xbf16>
    %cst_18 = arith.constant dense<0.000000e+00> : vector<16x256xf32>
    %86 = tpu.matmul %59, %85, %cst_18 {dimension_numbers = #tpu.dot_dimension_numbers<[1], [0], [0], [1], [0, 0, 1, 1], [], []>} : vector<16x144xbf16>, vector<144x256xbf16>, vector<16x256xf32> -> vector<16x256xf32>
    %c0_19 = arith.constant 0 : index
    %c0_20 = arith.constant 0 : index
    %87 = vector.load %arg6[%c0_19, %c0_20] : memref<16x1xf32, #tpu.memory_space<vmem>>, vector<16x1xf32>
    %88 = vector.broadcast %87 : vector<16x1xf32> to vector<16x256xf32>
    %89 = arith.addf %86, %88 : vector<16x256xf32>
    %90 = arith.addf %89, %0 : vector<16x256xf32>
    %cst_21 = arith.constant 5.000000e-01 : f32
    %91 = vector.broadcast %cst_21 : f32 to vector<16x256xf32>
    %92 = arith.mulf %91, %90 : vector<16x256xf32>
    %cst_22 = arith.constant 0.707106769 : f32
    %93 = vector.broadcast %cst_22 : f32 to vector<16x256xf32>
    %94 = arith.mulf %90, %93 : vector<16x256xf32>
    %95 = math.absf %94 : vector<16x256xf32>
    %cst_23 = arith.constant 0.327591091 : f32
    %96 = vector.broadcast %cst_23 : f32 to vector<16x256xf32>
    %97 = arith.mulf %96, %95 : vector<16x256xf32>
    %cst_24 = arith.constant 1.000000e+00 : f32
    %98 = vector.broadcast %cst_24 : f32 to vector<16x256xf32>
    %99 = arith.addf %98, %97 : vector<16x256xf32>
    %100 = tpu.reciprocal %99 {approx = true} : vector<16x256xf32> -> vector<16x256xf32>
    %cst_25 = arith.constant 1.06140542 : f32
    %101 = vector.broadcast %cst_25 : f32 to vector<16x256xf32>
    %102 = arith.mulf %101, %100 : vector<16x256xf32>
    %cst_26 = arith.constant -1.45315206 : f32
    %103 = vector.broadcast %cst_26 : f32 to vector<16x256xf32>
    %104 = arith.addf %102, %103 : vector<16x256xf32>
    %105 = arith.mulf %104, %100 : vector<16x256xf32>
    %cst_27 = arith.constant 1.42141378 : f32
    %106 = vector.broadcast %cst_27 : f32 to vector<16x256xf32>
    %107 = arith.addf %105, %106 : vector<16x256xf32>
    %108 = arith.mulf %107, %100 : vector<16x256xf32>
    %cst_28 = arith.constant -0.284496725 : f32
    %109 = vector.broadcast %cst_28 : f32 to vector<16x256xf32>
    %110 = arith.addf %108, %109 : vector<16x256xf32>
    %111 = arith.mulf %110, %100 : vector<16x256xf32>
    %cst_29 = arith.constant 0.254829586 : f32
    %112 = vector.broadcast %cst_29 : f32 to vector<16x256xf32>
    %113 = arith.addf %111, %112 : vector<16x256xf32>
    %114 = arith.mulf %113, %100 : vector<16x256xf32>
    %cst_30 = arith.constant 0.000000e+00 : f32
    %115 = vector.broadcast %cst_30 : f32 to vector<16x256xf32>
    %116 = arith.subf %115, %95 : vector<16x256xf32>
    %117 = arith.mulf %116, %95 : vector<16x256xf32>
    %118 = math.exp %117 : vector<16x256xf32>
    %119 = arith.mulf %114, %118 : vector<16x256xf32>
    %cst_31 = arith.constant 1.000000e+00 : f32
    %120 = vector.broadcast %cst_31 : f32 to vector<16x256xf32>
    %121 = arith.subf %120, %119 : vector<16x256xf32>
    %122 = tpu.bitcast %94 : vector<16x256xf32> -> vector<16x256xi32>
    %c-2147483648_i32 = arith.constant -2147483648 : i32
    %123 = vector.broadcast %c-2147483648_i32 : i32 to vector<16x256xi32>
    %124 = arith.andi %122, %123 : vector<16x256xi32>
    %125 = tpu.bitcast %121 : vector<16x256xf32> -> vector<16x256xi32>
    %126 = arith.ori %125, %124 : vector<16x256xi32>
    %127 = tpu.bitcast %126 : vector<16x256xi32> -> vector<16x256xf32>
    %cst_32 = arith.constant 1.000000e+00 : f32
    %128 = vector.broadcast %cst_32 : f32 to vector<16x256xf32>
    %129 = arith.addf %128, %127 : vector<16x256xf32>
    %130 = arith.mulf %92, %129 : vector<16x256xf32>
    %c0_33 = arith.constant 0 : index
    %c0_34 = arith.constant 0 : index
    %131 = vector.load %arg7[%c0_33, %c0_34] : memref<16x256xf32, #tpu.memory_space<vmem>>, vector<16x256xf32>
    tpu.vector_store %arg7[%c0_33, %c0_34], %130 {strides = array<i32>} : memref<16x256xf32, #tpu.memory_space<vmem>>, vector<16x256xf32>,
    return
  }
  func.func @transform_0(%arg0: i32) -> (i32, i32) {
    %c0_i32 = arith.constant 0 : i32
    %c0_i32_0 = arith.constant 0 : i32
    %c0_i32_1 = arith.constant 0 : i32
    return %c0_i32, %c0_i32_0 : i32, i32
  }
  func.func @transform_1(%arg0: i32) -> (i32, i32) {
    %c0_i32 = arith.constant 0 : i32
    %c0_i32_0 = arith.constant 0 : i32
    return %c0_i32, %arg0 : i32, i32
  }
  func.func @transform_2(%arg0: i32) -> (i32, i32) {
    %c0_i32 = arith.constant 0 : i32
    %c0_i32_0 = arith.constant 0 : i32
    %c0_i32_1 = arith.constant 0 : i32
    return %c0_i32, %c0_i32_0 : i32, i32
  }
  func.func @transform_3(%arg0: i32) -> (i32, i32) {
    %c0_i32 = arith.constant 0 : i32
    %c0_i32_0 = arith.constant 0 : i32
    %c0_i32_1 = arith.constant 0 : i32
    return %c0_i32, %c0_i32_0 : i32, i32
  }
  func.func @transform_4(%arg0: i32) -> (i32, i32) {
    %c0_i32 = arith.constant 0 : i32
    %c0_i32_0 = arith.constant 0 : i32
    %c0_i32_1 = arith.constant 0 : i32
    return %c0_i32, %c0_i32_0 : i32, i32
  }
  func.func @transform_5(%arg0: i32) -> (i32, i32) {
    %c0_i32 = arith.constant 0 : i32
    %c0_i32_0 = arith.constant 0 : i32
    %c0_i32_1 = arith.constant 0 : i32
    return %c0_i32, %c0_i32_0 : i32, i32
  }
  func.func @transform_6(%arg0: i32) -> (i32, i32) {
    %c0_i32 = arith.constant 0 : i32
    %c0_i32_0 = arith.constant 0 : i32
    return %c0_i32, %arg0 : i32, i32
  }
}

</mosaic_0001>

<bundles_post_ra>
// kernel: common_block.1
= control target key start
LH: loop header
LB: loop body
LE: loop exit
PB: predicated region body
PF: predicated region fallthrough
CT: control target
= control target key end

     0   :  { %s1326_s21 = smov 0   ;;  %s1328_s22 = smov 0   ;;  %s1896_s0 = inlined_call_operand.vmem [shape: f32[9,256], index: 0, kind: input, shape index: {}]   ;;  %s1897_s1 = inlined_call_operand.vmem [shape: f32[16,512], index: 1, kind: input, shape index: {}]   ;;  %s1898_s2 = inlined_call_operand.vmem [shape: bf16[16,144], index: 2, kind: input, shape index: {}]   ;;  %s1899_s3 = inlined_call_operand.vmem [shape: f32[16,1], index: 3, kind: input, shape index: {}]   ;;  %s1900_s4 = inlined_call_operand.vmem [shape: bf16[16,144], index: 4, kind: input, shape index: {}]   ;;  %s1901_s5 = inlined_call_operand.vmem [shape: f32[16,1], index: 5, kind: input, shape index: {}]   ;;  %s1902_s6 = inlined_call_operand.vmem [shape: f32[16,512], index: 6, kind: output, shape index: {}]  }
   0x1   :  { %s1330_s23 = smov 0  }
   0x2 LB: > { %s1159_s24 = sadd.s32 4294967295, %s1280_s23   ;;  %s1343_s25 = sadd.s32 1, %s1280_s23   ;;  %s1280_s23 = sphi %s1330_s23, %s1906_s23   ;;  %s1276_s22 = sphi %s1328_s22, %s1905_s22   ;;  %s1272_s21 = sphi %s1326_s21, %s1904_s21  }
   0x3   : > { %s41_s26 = ssub.s32 %s1280_s23, %s1343_s25  ;;  %s44_s27 = sadd.s32 1, %s1276_s22 }
   0x4   : > { %p42_p0 = scmp.eq.s32.totalorder %s41_s26, 0  ;;  %p51_p1 = scmp.ne.s32.totalorder %s1276_s22, %s1272_s21 }
   0x5   : > { %p52_p2 = scmp.eq.s32.totalorder %s1280_s23, 0  ;;  %p165_p3 = scmp.eq.s32.totalorder %s1159_s24, 1 }
   0x6   : > { %s1354_s28 = scalar_select %p42_p0, %s1276_s22, %s44_s27  }
   0x7   : > { %p53_p4 = por %p52_p2, %p51_p1  ;;  %p1356_p5 = por %p165_p3, %p51_p1 }
   0x8   : > { %p1162_p6 = scmp.ge.s32.totalorder %s1280_s23, 2 }
   0xa   : > { %202 = sbr.rel (%p1162_p6) target bundleno = 23 (0x17), region = 36 }
   0xf   : > { %205 = sbr.rel (!%p53_p4) target bundleno = 23 (0x17), region = 40  ;;  %s207_s30 = sand.u32 (%p53_p4), 1, %s1276_s22  }
  0x10   : > { %s1194_s7 = sshll.u32 (%p53_p4), %s1280_s23, 4  ;;  %s1163_s8 = sshll.u32 (%p53_p4), %s207_s30, 5 }
  0x11   : > { %s212_s11 = scalar_lea.vmem (%p53_p4), %s1897_s1, %s1194_s7  ;;  %s209_s12 = scalar_lea.vmem (%p53_p4), [#allocation2], %s1163_s8 }
  0x12   : > { %v225_v0 = vld [vmem:[%s212_s11] sm:$0xff] (%p53_p4)  ;;  %v227_v1 = vld [vmem:[%s212_s11 + $0x8] sm:$0xff] (%p53_p4) }
  0x13   : > { %v229_v2 = vld [vmem:[%s212_s11 + $0x20] sm:$0xff] (%p53_p4)  ;;  %226 = vst [vmem:[%s209_s12] sm:$0xff] (%p53_p4), %v225_v0  ;;  %v231_v3 = vld [vmem:[%s212_s11 + $0x28] sm:$0xff] (%p53_p4) }
  0x14   : > { %228 = vst [vmem:[%s209_s12 + $0x8] sm:$0xff] %v227_v1 }
  0x15   : > { %230 = vst [vmem:[%s209_s12 + $0x10] sm:$0xff] %v229_v2 }
  0x16   : > { %232 = vst [vmem:[%s209_s12 + $0x18] sm:$0xff] %v231_v3 }
  0x17 PF: > { %p1166_p7 = scmp.ge.s32.totalorder %s1280_s23, 1  ;;  %p237_p8 = scmp.lt.s32.totalorder %s1280_s23, 3 }
  0x19   : > { %p238_p9 = pnand %p1166_p7, %p237_p8 }
  0x1a   : > { %s244_s13 = sand.u32 (!%p238_p9), 1, %s1272_s21   ;;  %s1282_s16 = smov (!%p238_p9), 112  }
  0x1b   : > { %241 = sbr.rel (%p238_p9) target bundleno = 776 (0x308), region = 63  ;;  %s1369_s14 = sshll.u32 (!%p238_p9), %s244_s13, 5 }
  0x1c   : > { %s1372_s15 = scalar_lea.vmem (!%p238_p9), [#allocation2], %s1369_s14  ;;  %s1283_s17 = smov (!%p238_p9), 113  }
  0x1d   : > { %s1284_s18 = smov (!%p238_p9), 127   ;;  %s1285_s19 = smov (!%p238_p9), 1  }
  0x1e   : > { %s1286_s20 = smov (!%p238_p9), 15   ;;  %s1287_s21 = smov (!%p238_p9), 16  }
  0x1f   : > { %s1288_s26 = smov (!%p238_p9), 17   ;;  %s1289_s27 = smov (!%p238_p9), 111  }
  0x20   : > { %v1375_v4 = vld [vmem:[%s1372_s15 + $0x8] sm:$0xff]  ;;  %v1378_v5 = vld [vmem:[%s1372_s15] sm:$0xff]  ;;  %v1387_v6 = vld [vmem:[%s1372_s15 + $0x18] sm:$0xff]  ;;  %v309_v9 = vlaneseq  ;;  %vm568_vm8 = vcmask 130048  }
  0x21   : > { %423 = vrot.lane.b32.xlu1 %v1375_v4, %s1282_s16  ;;  %419 = vrot.lane.b32.xlu0 %v1378_v5, %s1282_s16  ;;  %v1390_v7 = vld [vmem:[%s1372_s15 + $0x10] sm:$0xff]  ;;  %v1455_v12 = vld [vmem:[%s1896_s0] sm:$0xff]  ;;  %v379_v63 = vpack.c.bf16 %v1375_v4, %v1378_v5 }
  0x22   : > { %400 = vrot.lane.b32.xlu2 %v1378_v5, %s1283_s17  ;;  %v1450_v11 = vand.u32 127, %v309_v9  ;;  %v1460_v13 = vld [vmem:[%s1896_s0 + $0x8] sm:$0xff]  ;;  %v1464_v16 = vperm.slane %v1455_v12, 7  ;;  %v1482_v31 = vperm.slane %v1455_v12, 6  ;;  %v1501_v52 = vperm.slane %v1455_v12, 5 }
  0x23   : > { %v1467_v17 = vperm.slane %v1460_v13, 7  ;;  %v1485_v32 = vperm.slane %v1460_v13, 6  ;;  %v1504_v53 = vperm.slane %v1460_v13, 5  ;;  %v380_v0 = vpack.c.bf16 %v1387_v6, %v1390_v7 }
  0x24   : > { %vm427_vm0 = vcmp.lt.s32.totalorder %v1450_v11, 112  ;;  %vm408_vm1 = vcmp.lt.s32.totalorder %v1450_v11, 113  ;;  %vm389_vm2 = vcmp.lt.s32.totalorder %v1450_v11, 127  ;;  %vm368_vm3 = vcmp.lt.s32.totalorder %v1450_v11, 1 }
  0x25   : > { %vm349_vm4 = vcmp.lt.s32.totalorder %v1450_v11, 15  ;;  %vm330_vm5 = vcmp.lt.s32.totalorder %v1450_v11, 16  ;;  %vm311_vm6 = vcmp.lt.s32.totalorder %v1450_v11, 17  ;;  %vm446_vm7 = vcmp.lt.s32.totalorder %v1450_v11, 111  ;;  %v1181_v11 = vld [vmem:[%s1900_s4] sm:$0xf] }
  0x29   : > { %425 = vrot.lane.b32.xlu1 %v1387_v6, %s1282_s16  ;;  %421 = vrot.lane.b32.xlu0 %v1390_v7, %s1282_s16 }
  0x2a   : > { %402 = vrot.lane.b32.xlu2 %v1390_v7, %s1283_s17 }
  0x31   : > { %406 = vrot.lane.b32.xlu1 %v1387_v6, %s1283_s17  ;;  %404 = vrot.lane.b32.xlu0 %v1375_v4, %s1283_s17 }
  0x32   : > { %381 = vrot.lane.b32.xlu2 %v1378_v5, %s1284_s18 }
  0x39   : > { %385 = vrot.lane.b32.xlu1 %v1375_v4, %s1284_s18  ;;  %383 = vrot.lane.b32.xlu0 %v1390_v7, %s1284_s18 }
  0x3a   : > { %387 = vrot.lane.b32.xlu2 %v1387_v6, %s1284_s18 }
  0x41   : > { %362 = vrot.lane.b32.xlu1 %v1390_v7, %s1285_s19  ;;  %360 = vrot.lane.b32.xlu0 %v1378_v5, %s1285_s19 }
  0x42   : > { %364 = vrot.lane.b32.xlu2 %v1375_v4, %s1285_s19 }
  0x49   : > { %341 = vrot.lane.b32.xlu1 %v1378_v5, %s1286_s20  ;;  %366 = vrot.lane.b32.xlu0 %v1387_v6, %s1285_s19 }
  0x4a   : > { %343 = vrot.lane.b32.xlu2 %v1390_v7, %s1286_s20 }
  0x51   : > { %347 = vrot.lane.b32.xlu1 %v1387_v6, %s1286_s20  ;;  %345 = vrot.lane.b32.xlu0 %v1375_v4, %s1286_s20 }
  0x52   : > { %322 = vrot.lane.b32.xlu2 %v1378_v5, %s1287_s21 }
  0x59   : > { %326 = vrot.lane.b32.xlu1 %v1375_v4, %s1287_s21  ;;  %324 = vrot.lane.b32.xlu0 %v1390_v7, %s1287_s21 }
  0x5a   : > { %328 = vrot.lane.b32.xlu2 %v1387_v6, %s1287_s21 }
  0x61   : > { %303 = vrot.lane.b32.xlu1 %v1390_v7, %s1288_s26  ;;  %301 = vrot.lane.b32.xlu0 %v1378_v5, %s1288_s26 }
  0x62   : > { %305 = vrot.lane.b32.xlu2 %v1375_v4, %s1288_s26 }
  0x69   : > { %438 = vrot.lane.b32.xlu1 %v1378_v5, %s1289_s27  ;;  %307 = vrot.lane.b32.xlu0 %v1387_v6, %s1288_s26 }
  0x6a   : > { %440 = vrot.lane.b32.xlu2 %v1390_v7, %s1289_s27 }
  0x71   : > { %444 = vrot.lane.b32.xlu1 %v1387_v6, %s1289_s27  ;;  %442 = vrot.lane.b32.xlu0 %v1375_v4, %s1289_s27 }
  0x7c   : > { %v401_v8 = vpop.permute.xlu2 %400 }
  0x84   : > { %v403_v10 = vpop.permute.xlu2 %402 }
  0x8c   : > { %v382_v20 = vpop.permute.xlu2 %381 }
  0x93   : > { %v424_v14 = vpop.permute.xlu1 %423  ;;  %v420_v15 = vpop.permute.xlu0 %419 }
  0x94   : > { %v428_v18 = vsel %vm427_vm0, %v420_v15, %v424_v14  ;;  %v430_v19 = vsel %vm427_vm0, %v424_v14, %v420_v15  ;;  %v388_v33 = vpop.permute.xlu2 %387  ;;  %v499_v14 = vunpack.c.l.b16 %v379_v63  ;;  %v501_v15 = vunpack.c.l.b16 %v380_v0 }
  0x95   : > { %v432_v21 = vmul.f32 %v428_v18, %v1464_v16  ;;  %v433_v22 = vmul.f32 %v430_v19, %v1467_v17  ;;  %v500_v18 = vunpack.c.h.b16 %v379_v63  ;;  %v502_v19 = vunpack.c.h.b16 %v380_v0 }
  0x97   : > { %v436_v29 = vpack.c.bf16 %v433_v22, %v432_v21 }
  0x99   : > { %v529_v34 = vunpack.c.l.b16 %v436_v29  ;;  %v530_v36 = vunpack.c.h.b16 %v436_v29  ;;  %v1525_v29 = vperm.slane %v1455_v12, 3 }
  0x9b   : > { %v426_v23 = vpop.permute.xlu1 %425  ;;  %v422_v24 = vpop.permute.xlu0 %421 }
  0x9c   : > { %v429_v25 = vsel %vm427_vm0, %v422_v24, %v426_v23  ;;  %v431_v26 = vsel %vm427_vm0, %v426_v23, %v422_v24  ;;  %v365_v58 = vpop.permute.xlu2 %364 }
  0x9d   : > { %v434_v27 = vmul.f32 %v429_v25, %v1464_v16  ;;  %v435_v28 = vmul.f32 %v431_v26, %v1467_v17 }
  0x9f   : > { %v437_v30 = vpack.c.bf16 %v435_v28, %v434_v27 }
  0xa1   : > { %v531_v35 = vunpack.c.l.b16 %v437_v30  ;;  %v532_v37 = vunpack.c.h.b16 %v437_v30  ;;  %v1528_v30 = vperm.slane %v1460_v13, 3 }
  0xa3   : > { %v407_v38 = vpop.permute.xlu1 %406  ;;  %v405_v39 = vpop.permute.xlu0 %404  ;;  %v533_v40 = vpack.c.b16 %v531_v35, %v529_v34  ;;  %v534_v41 = vpack.c.b16 %v532_v37, %v530_v36  ;;  %v504_v34 = vpack.c.b16 %v502_v19, %v500_v18 }
  0xa4   : > { %v410_v42 = vsel %vm408_vm1, %v403_v10, %v407_v38  ;;  %v412_v43 = vsel %vm408_vm1, %v407_v38, %v403_v10  ;;  %v409_v44 = vsel %vm408_vm1, %v401_v8, %v405_v39  ;;  %v411_v45 = vsel %vm408_vm1, %v405_v39, %v401_v8  ;;  %v344_v28 = vpop.permute.xlu2 %343 }
  0xa5   : > { %v415_v46 = vmul.f32 %v410_v42, %v1482_v31  ;;  %v416_v47 = vmul.f32 %v412_v43, %v1485_v32  ;;  %v413_v48 = vmul.f32 %v409_v44, %v1482_v31  ;;  %v414_v49 = vmul.f32 %v411_v45, %v1485_v32  ;;  %572 = vmatpush.bf16.msra.mxu0 %v533_v40 }
  0xa6   : > { %600 = vmatpush.bf16.msra.mxu2 %v534_v41 }
  0xa7   : > { %v418_v50 = vpack.c.bf16 %v416_v47, %v415_v46  ;;  %v417_v51 = vpack.c.bf16 %v414_v49, %v413_v48  ;;  %v1543_v48 = vperm.slane %v1455_v12, 2  ;;  %v1546_v49 = vperm.slane %v1460_v13, 2 }
  0xa9   : > { %v519_v54 = vunpack.c.l.b16 %v417_v51  ;;  %v521_v55 = vunpack.c.l.b16 %v418_v50  ;;  %v520_v56 = vunpack.c.h.b16 %v417_v51  ;;  %v522_v57 = vunpack.c.h.b16 %v418_v50 }
  0xab   : > { %v386_v59 = vpop.permute.xlu1 %385  ;;  %v384_v60 = vpop.permute.xlu0 %383  ;;  %v523_v61 = vpack.c.b16 %v521_v55, %v519_v54  ;;  %v524_v62 = vpack.c.b16 %v522_v57, %v520_v56 }
  0xac   : > { %v390_v1 = vsel %vm389_vm2, %v382_v20, %v386_v59  ;;  %v392_v2 = vsel %vm389_vm2, %v386_v59, %v382_v20  ;;  %v391_v3 = vsel %vm389_vm2, %v384_v60, %v388_v33  ;;  %v393_v8 = vsel %vm389_vm2, %v388_v33, %v384_v60  ;;  %v323_v46 = vpop.permute.xlu2 %322 }
  0xad   : > { %v394_v9 = vmul.f32 %v390_v1, %v1501_v52  ;;  %v395_v10 = vmul.f32 %v392_v2, %v1504_v53  ;;  %v396_v4 = vmul.f32 %v391_v3, %v1501_v52  ;;  %v397_v5 = vmul.f32 %v393_v8, %v1504_v53  ;;  %573 = vmatpush.bf16.msra.mxu0 %v523_v61 }
  0xae   : > { %601 = vmatpush.bf16.msra.mxu2 %v524_v62  ;;  %v503_v33 = vpack.c.b16 %v501_v15, %v499_v14 }
  0xaf   : > { %v398_v6 = vpack.c.bf16 %v395_v10, %v394_v9  ;;  %v399_v7 = vpack.c.bf16 %v397_v5, %v396_v4  ;;  %v1562_v10 = vperm.slane %v1455_v12, 1  ;;  %v1565_v4 = vperm.slane %v1460_v13, 1 }
  0xb1   : > { %v509_v20 = vunpack.c.l.b16 %v398_v6  ;;  %v511_v21 = vunpack.c.l.b16 %v399_v7  ;;  %v510_v22 = vunpack.c.h.b16 %v398_v6  ;;  %v512_v23 = vunpack.c.h.b16 %v399_v7 }
  0xb3   : > { %v363_v24 = vpop.permute.xlu1 %362  ;;  %v361_v25 = vpop.permute.xlu0 %360  ;;  %v513_v26 = vpack.c.b16 %v511_v21, %v509_v20  ;;  %v514_v27 = vpack.c.b16 %v512_v23, %v510_v22 }
  0xb4   : > { %v369_v35 = vsel %vm368_vm3, %v361_v25, %v365_v58  ;;  %v371_v36 = vsel %vm368_vm3, %v365_v58, %v361_v25  ;;  %v329_v5 = vpop.permute.xlu2 %328 }
  0xb5   : > { %574 = vmatpush.bf16.msra.mxu0 %v513_v26  ;;  %602 = vmatpush.bf16.msra.mxu2 %v514_v27  ;;  %v373_v37 = vmul.f32 %v371_v36, %v1525_v29  ;;  %v374_v38 = vmul.f32 %v369_v35, %v1528_v30 }
  0xb7   : > { %v377_v43 = vpack.c.bf16 %v374_v38, %v373_v37 }
  0xb9   : > { %575 = vmatpush.bf16.msra.mxu0 %v503_v33  ;;  %603 = vmatpush.bf16.msra.mxu2 %v504_v34  ;;  %v489_v50 = vunpack.c.l.b16 %v377_v43  ;;  %v490_v54 = vunpack.c.h.b16 %v377_v43 }
  0xbb   : > { %v342_v39 = vpop.permute.xlu1 %341  ;;  %v367_v40 = vpop.permute.xlu0 %366 }
  0xbc   : > { %v370_v41 = vsel %vm368_vm3, %v363_v24, %v367_v40  ;;  %v372_v42 = vsel %vm368_vm3, %v367_v40, %v363_v24  ;;  %v306_v40 = vpop.permute.xlu2 %305 }
  0xbd   : > { %v375_v44 = vmul.f32 %v372_v42, %v1525_v29  ;;  %v376_v45 = vmul.f32 %v370_v41, %v1528_v30 }
  0xbf   : > { %v378_v47 = vpack.c.bf16 %v376_v45, %v375_v44  ;;  %v1582_v45 = vperm.slane %v1455_v12, 0  ;;  %v548_v12 = vld [vmem:[%s1899_s3 + $0x8] sm:$0xff] }
  0xc1   : > { %v491_v51 = vunpack.c.l.b16 %v378_v47  ;;  %v492_v55 = vunpack.c.h.b16 %v378_v47 }
  0xc3   : > { %v348_v56 = vpop.permute.xlu1 %347  ;;  %v346_v57 = vpop.permute.xlu0 %345  ;;  %v493_v58 = vpack.c.b16 %v491_v51, %v489_v50  ;;  %v494_v59 = vpack.c.b16 %v492_v55, %v490_v54  ;;  %v1290_v55 = vmov 0  }
  0xc4   : > { %v351_v60 = vsel %vm349_vm4, %v344_v28, %v348_v56  ;;  %v353_v61 = vsel %vm349_vm4, %v348_v56, %v344_v28  ;;  %v350_v62 = vsel %vm349_vm4, %v342_v39, %v346_v57  ;;  %v352_v63 = vsel %vm349_vm4, %v346_v57, %v342_v39  ;;  %1234 = vset.pattern.permute.xlu0 %v1290_v55 }
  0xc5   : > { %v356_v0 = vmul.f32 %v353_v61, %v1543_v48  ;;  %v357_v1 = vmul.f32 %v351_v60, %v1546_v49  ;;  %v354_v2 = vmul.f32 %v352_v63, %v1543_v48  ;;  %v355_v3 = vmul.f32 %v350_v62, %v1546_v49  ;;  %576 = vmatpush.bf16.msra.mxu0 %v493_v58 }
  0xc6   : > { %604 = vmatpush.bf16.msra.mxu2 %v494_v59  ;;  %1233 = vset.pattern.permute.xlu2 %v1290_v55 }
  0xc7   : > { %v359_v8 = vpack.c.bf16 %v357_v1, %v356_v0  ;;  %v358_v9 = vpack.c.bf16 %v355_v3, %v354_v2  ;;  %556 = vperm.xlu0 %1234, %v548_v12   ;;  %1235 = vset.pattern.permute.xlu1 %v1290_v55  ;;  %v1171_v0 = vld [vmem:[%s1898_s2] sm:$0xf]  ;;  %v1196_v1 = vld [vmem:[%s1898_s2 + $0x4] sm:$0xf0]  ;;  %v1615_v2 = vld [vmem:[%s1896_s0 + $0x10] ss:$0 sm:$0xff] }
  0xc8   : > { %v1620_v3 = vld [vmem:[%s1896_s0 + $0x18] ss:$0 sm:$0xff] }
  0xc9   : > { %v479_v6 = vunpack.c.l.b16 %v358_v9  ;;  %v481_v7 = vunpack.c.l.b16 %v359_v8  ;;  %v480_v14 = vunpack.c.h.b16 %v358_v9  ;;  %v482_v15 = vunpack.c.h.b16 %v359_v8  ;;  %v441_v8 = vpop.permute.xlu2 %440 }
  0xcb   : > { %v327_v18 = vpop.permute.xlu1 %326  ;;  %v325_v19 = vpop.permute.xlu0 %324  ;;  %v483_v20 = vpack.c.b16 %v481_v7, %v479_v6  ;;  %v484_v21 = vpack.c.b16 %v482_v15, %v480_v14 }
  0xcc   : > { %v331_v22 = vsel %vm330_vm5, %v323_v46, %v327_v18  ;;  %v333_v23 = vsel %vm330_vm5, %v327_v18, %v323_v46  ;;  %v332_v24 = vsel %vm330_vm5, %v325_v19, %v329_v5  ;;  %v334_v25 = vsel %vm330_vm5, %v329_v5, %v325_v19 }
  0xcd   : > { %v335_v26 = vmul.f32 %v333_v23, %v1562_v10  ;;  %v336_v27 = vmul.f32 %v331_v22, %v1565_v4  ;;  %v337_v28 = vmul.f32 %v334_v25, %v1562_v10  ;;  %v338_v33 = vmul.f32 %v332_v24, %v1565_v4  ;;  %577 = vmatpush.bf16.msra.mxu0 %v483_v20 }
  0xce   : > { %605 = vmatpush.bf16.msra.mxu2 %v484_v21  ;;  %v1585_v46 = vperm.slane %v1460_v13, 0  ;;  %v547_v13 = vld [vmem:[%s1899_s3] sm:$0xff]  ;;  %v1172_v20 = vor.u32 %v1196_v1, %v1171_v0 }
  0xcf   : > { %v339_v34 = vpack.c.bf16 %v336_v27, %v335_v26  ;;  %v340_v35 = vpack.c.bf16 %v338_v33, %v337_v28  ;;  %551 = vperm.xlu2 %1233, %v547_v13  }
  0xd1   : > { %v469_v36 = vunpack.c.l.b16 %v339_v34  ;;  %v471_v37 = vunpack.c.l.b16 %v340_v35  ;;  %v470_v38 = vunpack.c.h.b16 %v339_v34  ;;  %v472_v39 = vunpack.c.h.b16 %v340_v35 }
  0xd3   : > { %v304_v41 = vpop.permute.xlu1 %303  ;;  %v302_v42 = vpop.permute.xlu0 %301  ;;  %v473_v43 = vpack.c.b16 %v471_v37, %v469_v36  ;;  %v474_v44 = vpack.c.b16 %v472_v39, %v470_v38  ;;  %v1195_v39 = vld [vmem:[%s1898_s2 + $0x4] sm:$0xf] }
  0xd4   : > { %v312_v47 = vsel %vm311_vm6, %v302_v42, %v306_v40  ;;  %v314_v50 = vsel %vm311_vm6, %v306_v40, %v302_v42  ;;  %v1173_v40 = vld [vmem:[%s1898_s2 + $0x8] sm:$0xf0] }
  0xd5   : > { %578 = vmatpush.bf16.msra.mxu0 %v473_v43  ;;  %606 = vmatpush.bf16.msra.mxu2 %v474_v44  ;;  %v316_v51 = vmul.f32 %v314_v50, %v1582_v45  ;;  %v317_v54 = vmul.f32 %v312_v47, %v1585_v46  ;;  %v1176_v43 = vor.u32 %v1195_v39, %v1173_v40 }
  0xd7   : > { %v320_v60 = vpack.c.bf16 %v317_v54, %v316_v51 }
  0xd9   : > { %v459_v9 = vunpack.c.l.b16 %v320_v60  ;;  %v460_v6 = vunpack.c.h.b16 %v320_v60 }
  0xdb   : > { %v439_v56 = vpop.permute.xlu1 %438  ;;  %v308_v57 = vpop.permute.xlu0 %307 }
  0xdc   : > { %v313_v58 = vsel %vm311_vm6, %v304_v41, %v308_v57  ;;  %v315_v59 = vsel %vm311_vm6, %v308_v57, %v304_v41 }
  0xdd   : > { %v318_v61 = vmul.f32 %v315_v59, %v1582_v45  ;;  %v319_v62 = vmul.f32 %v313_v58, %v1585_v46 }
  0xdf   : > { %v321_v63 = vpack.c.bf16 %v319_v62, %v318_v61 }
  0xe1   : > { %v461_v5 = vunpack.c.l.b16 %v321_v63  ;;  %v462_v7 = vunpack.c.h.b16 %v321_v63 }
  0xe3   : > { %v445_v14 = vpop.permute.xlu1 %444  ;;  %v443_v15 = vpop.permute.xlu0 %442  ;;  %v463_v18 = vpack.c.b16 %v461_v5, %v459_v9  ;;  %v464_v19 = vpack.c.b16 %v462_v7, %v460_v6 }
  0xe4   : > { %v448_v21 = vsel %vm446_vm7, %v441_v8, %v445_v14  ;;  %v450_v22 = vsel %vm446_vm7, %v445_v14, %v441_v8  ;;  %v447_v23 = vsel %vm446_vm7, %v439_v56, %v443_v15  ;;  %v449_v24 = vsel %vm446_vm7, %v443_v15, %v439_v56 }
  0xe5   : > { %v453_v25 = vmul.f32 %v1615_v2, %v448_v21  ;;  %v454_v26 = vmul.f32 %v1620_v3, %v450_v22  ;;  %v451_v27 = vmul.f32 %v1615_v2, %v447_v23  ;;  %v452_v28 = vmul.f32 %v1620_v3, %v449_v24  ;;  %579 = vmatpush.bf16.msra.mxu0 %v463_v18  ;;  %v871_v23 = vld [vmem:[%s1901_s5 + $0x8] sm:$0xff] }
  0xe6   : > { %607 = vmatpush.bf16.msra.mxu2 %v464_v19 }
  0xe7   : > { %v455_v33 = vpack.c.bf16 %v452_v28, %v451_v27  ;;  %v456_v34 = vpack.c.bf16 %v454_v26, %v453_v25 }
  0xe8   : > { %580 = vmatmul.bf16.vlgmr.msra.gmra.mxu0 %v1172_v20 }
  0xe9   : > { %608 = vmatmul.bf16.vlgmr.msra.gmra.mxu2 %v1172_v20  ;;  %v539_v35 = vunpack.c.l.b16 %v455_v33  ;;  %v541_v36 = vunpack.c.l.b16 %v456_v34  ;;  %v540_v37 = vunpack.c.h.b16 %v455_v33  ;;  %v542_v38 = vunpack.c.h.b16 %v456_v34 }
  0xeb   : > { %v543_v41 = vpack.c.b16 %v541_v36, %v539_v35  ;;  %v544_v42 = vpack.c.b16 %v542_v38, %v540_v37 }
  0xed   : > { %593 = vmatpush.bf16.msra.mxu1 %v543_v41  ;;  %621 = vmatpush.bf16.msrb.mxu2 %v544_v42 }
  0xf0   : > { %1177 = vmatmul.msk.bf16.vlgmr.msra.gmra.mxu1 %vm568_vm8, %v1176_v43 }
  0xf9   : > { %1178 = vmatmul.msk.bf16.vlgmr.msrb.gmra.mxu2 %vm568_vm8, %v1176_v43 }
 0x129   : > { %v552_v47 = vpop.permute.xlu2 %551 }
 0x139   : > { %v557_v55 = vpop.permute.xlu0 %556 }
 0x165   : > { %v581_v44 = vpop.f32.mrf.mxu0 }
 0x166   : > { %v582_v50 = vadd.f32 %v581_v44, %v552_v47 }
 0x16c   : > { %v609_v51 = vpop.f32.mrf.mxu2 }
 0x16d   : > { %v595_v54 = vpop.f32.mrf.mxu1  ;;  %v583_v56 = vpop.f32.mrf.mxu0  ;;  %v610_v63 = vadd.f32 %v609_v51, %v552_v47 }
 0x16e   : > { %v596_v12 = vadd.f32 %v595_v54, %v582_v50  ;;  %v584_v57 = vadd.f32 %v583_v56, %v557_v55 }
 0x170   : > { %v628_v13 = vmax.f32 %v596_v12, 0.0 }
 0x172   : > { %762 = vrot.lane.b32.xlu2 %v628_v13, %s1289_s27  ;;  %726 = vrot.lane.b32.xlu0 %v628_v13, %s1283_s17 }
 0x173   : > { %744 = vrot.lane.b32.xlu1 %v628_v13, %s1282_s16 }
 0x174   : > { %v611_v58 = vpop.f32.mrf.mxu2 }
 0x175   : > { %v597_v59 = vpop.f32.mrf.mxu1  ;;  %v612_v1 = vadd.f32 %v611_v58, %v557_v55 }
 0x176   : > { %v598_v60 = vadd.f32 %v597_v59, %v584_v57 }
 0x178   : > { %v630_v61 = vmax.f32 %v598_v60, 0.0 }
 0x17a   : > { %746 = vrot.lane.b32.xlu2 %v630_v61, %s1282_s16  ;;  %688 = vrot.lane.b32.xlu0 %v628_v13, %s1285_s19 }
 0x17b   : > { %708 = vrot.lane.b32.xlu1 %v628_v13, %s1284_s18 }
 0x17c   : > { %v623_v62 = vpop.f32.mrf.mxu2 }
 0x17d   : > { %v624_v0 = vadd.f32 %v623_v62, %v610_v63 }
 0x17f   : > { %v629_v8 = vmax.f32 %v624_v0, 0.0 }
 0x181   : > { %v706_v7 = vpack.c.bf16 %v629_v8, %v628_v13 }
 0x182   : > { %710 = vrot.lane.b32.xlu2 %v630_v61, %s1284_s18  ;;  %764 = vrot.lane.b32.xlu0 %v630_v61, %s1289_s27 }
 0x183   : > { %670 = vrot.lane.b32.xlu1 %v628_v13, %s1286_s20  ;;  %v822_v15 = vunpack.c.l.b16 %v706_v7  ;;  %v823_v19 = vunpack.c.h.b16 %v706_v7 }
 0x184   : > { %v625_v9 = vpop.f32.mrf.mxu2 }
 0x185   : > { %v626_v5 = vadd.f32 %v625_v9, %v612_v1 }
 0x187   : > { %v631_v6 = vmax.f32 %v626_v5, 0.0 }
 0x189   : > { %v707_v14 = vpack.c.bf16 %v631_v6, %v630_v61 }
 0x18a   : > { %672 = vrot.lane.b32.xlu2 %v630_v61, %s1286_s20  ;;  %712 = vrot.lane.b32.xlu0 %v629_v8, %s1284_s18 }
 0x18b   : > { %728 = vrot.lane.b32.xlu1 %v630_v61, %s1283_s17  ;;  %v824_v18 = vunpack.c.l.b16 %v707_v14  ;;  %v825_v20 = vunpack.c.h.b16 %v707_v14 }
 0x18d   : > { %v1654_v21 = vpack.c.b16 %v824_v18, %v822_v15  ;;  %v1656_v22 = vpack.c.b16 %v825_v20, %v823_v19 }
 0x192   : > { %730 = vrot.lane.b32.xlu2 %v629_v8, %s1283_s17  ;;  %674 = vrot.lane.b32.xlu0 %v629_v8, %s1286_s20 }
 0x193   : > { %690 = vrot.lane.b32.xlu1 %v630_v61, %s1285_s19 }
 0x19a   : > { %692 = vrot.lane.b32.xlu2 %v629_v8, %s1285_s19  ;;  %654 = vrot.lane.b32.xlu0 %v630_v61, %s1287_s21 }
 0x19b   : > { %748 = vrot.lane.b32.xlu1 %v629_v8, %s1282_s16 }
 0x1a2   : > { %750 = vrot.lane.b32.xlu2 %v631_v6, %s1282_s16  ;;  %732 = vrot.lane.b32.xlu0 %v631_v6, %s1283_s17 }
 0x1a3   : > { %766 = vrot.lane.b32.xlu1 %v629_v8, %s1289_s27 }
 0x1aa   : > { %652 = vrot.lane.b32.xlu2 %v628_v13, %s1287_s21  ;;  %694 = vrot.lane.b32.xlu0 %v631_v6, %s1285_s19 }
 0x1ab   : > { %714 = vrot.lane.b32.xlu1 %v631_v6, %s1284_s18 }
 0x1b2   : > { %768 = vrot.lane.b32.xlu2 %v631_v6, %s1289_s27  ;;  %634 = vrot.lane.b32.xlu0 %v628_v13, %s1288_s26 }
 0x1b3   : > { %656 = vrot.lane.b32.xlu1 %v629_v8, %s1287_s21 }
 0x1ba   : > { %658 = vrot.lane.b32.xlu2 %v631_v6, %s1287_s21  ;;  %640 = vrot.lane.b32.xlu0 %v631_v6, %s1288_s26 }
 0x1bb   : > { %676 = vrot.lane.b32.xlu1 %v631_v6, %s1286_s20 }
 0x1c2   : > { %638 = vrot.lane.b32.xlu2 %v629_v8, %s1288_s26 }
 0x1c3   : > { %636 = vrot.lane.b32.xlu1 %v630_v61, %s1288_s26 }
 0x1ca   : > { %879 = vperm.xlu2 %1233, %v871_v23  }
 0x1cc   : > { %v763_v24 = vpop.permute.xlu2 %762 }
 0x1d4   : > { %v747_v25 = vpop.permute.xlu2 %746 }
 0x1dc   : > { %v1681_v26 = vpop.permute.xlu2 %710 }
 0x1e4   : > { %v1683_v27 = vpop.permute.xlu2 %672  ;;  %v727_v28 = vpop.permute.xlu0 %726 }
 0x1e5   : > { %v745_v33 = vpop.permute.xlu1 %744 }
 0x1ec   : > { %v731_v34 = vpop.permute.xlu2 %730  ;;  %v1685_v35 = vpop.permute.xlu0 %688 }
 0x1ed   : > { %v709_v36 = vpop.permute.xlu1 %708  ;;  %v734_v55 = vsel %vm408_vm1, %v727_v28, %v731_v34  ;;  %v736_v56 = vsel %vm408_vm1, %v731_v34, %v727_v28 }
 0x1ee   : > { %v738_v63 = vmul.f32 %v734_v55, %v1482_v31  ;;  %v739_v0 = vmul.f32 %v736_v56, %v1485_v32 }
 0x1f0   : > { %v1719_v7 = vpack.c.bf16 %v739_v0, %v738_v63  ;;  %v1197_v63 = vld [vmem:[%s1900_s4 + $0x4] sm:$0xf]  ;;  %v1183_v0 = vld [vmem:[%s1900_s4 + $0x8] sm:$0xf0] }
 0x1f4   : > { %v1687_v37 = vpop.permute.xlu2 %692  ;;  %v765_v38 = vpop.permute.xlu0 %764 }
 0x1f5   : > { %v1689_v39 = vpop.permute.xlu1 %670 }
 0x1fc   : > { %v751_v40 = vpop.permute.xlu2 %750  ;;  %v713_v41 = vpop.permute.xlu0 %712 }
 0x1fd   : > { %v729_v42 = vpop.permute.xlu1 %728  ;;  %v753_v50 = vsel %vm427_vm0, %v747_v25, %v751_v40  ;;  %v755_v51 = vsel %vm427_vm0, %v751_v40, %v747_v25  ;;  %v716_v23 = vsel %vm389_vm2, %v709_v36, %v713_v41  ;;  %v718_v25 = vsel %vm389_vm2, %v713_v41, %v709_v36 }
 0x1fe   : > { %v758_v54 = vmul.f32 %v753_v50, %v1464_v16  ;;  %v759_v12 = vmul.f32 %v755_v51, %v1467_v17  ;;  %v721_v36 = vmul.f32 %v718_v25, %v1504_v53  ;;  %v870_v25 = vld [vmem:[%s1901_s5] sm:$0xff] }
 0x1ff   : > { %874 = vperm.xlu1 %1235, %v870_v25  }
 0x200   : > { %v761_v1 = vpack.c.bf16 %v759_v12, %v758_v54  ;;  %v720_v54 = vmul.f32 %v716_v23, %v1501_v52 }
 0x202   : > { %v854_v15 = vunpack.c.l.b16 %v761_v1 }
 0x204   : > { %v1691_v43 = vpop.permute.xlu0 %674  ;;  %v1693_v44 = vpop.permute.xlu2 %652 }
 0x205   : > { %v691_v47 = vpop.permute.xlu1 %690 }
 0x20c   : > { %v1701_v13 = vpop.permute.xlu0 %654  ;;  %v769_v60 = vpop.permute.xlu2 %768 }
 0x20d   : > { %v749_v57 = vpop.permute.xlu1 %748  ;;  %v771_v9 = vsel %vm446_vm7, %v765_v38, %v769_v60  ;;  %v773_v5 = vsel %vm446_vm7, %v769_v60, %v765_v38 }
 0x20e   : > { %v752_v58 = vsel %vm427_vm0, %v745_v33, %v749_v57  ;;  %v754_v59 = vsel %vm427_vm0, %v749_v57, %v745_v33 }
 0x20f   : > { %v756_v61 = vmul.f32 %v752_v58, %v1464_v16  ;;  %v757_v62 = vmul.f32 %v754_v59, %v1467_v17  ;;  %v776_v16 = vmul.f32 %v1615_v2, %v771_v9  ;;  %v777_v17 = vmul.f32 %v1620_v3, %v773_v5 }
 0x210   : > { %v724_v58 = vpack.c.bf16 %v721_v36, %v720_v54 }
 0x211   : > { %v760_v8 = vpack.c.bf16 %v757_v62, %v756_v61  ;;  %v855_v62 = vunpack.c.h.b16 %v761_v1 }
 0x213   : > { %v852_v6 = vunpack.c.l.b16 %v760_v8 }
 0x214   : > { %v733_v14 = vpop.permute.xlu0 %732 }
 0x215   : > { %v735_v18 = vsel %vm408_vm1, %v729_v42, %v733_v14  ;;  %v737_v19 = vsel %vm408_vm1, %v733_v14, %v729_v42  ;;  %v767_v20 = vpop.permute.xlu1 %766  ;;  %v856_v40 = vpack.c.b16 %v854_v15, %v852_v6 }
 0x216   : > { %v740_v28 = vmul.f32 %v735_v18, %v1482_v31  ;;  %v741_v33 = vmul.f32 %v737_v19, %v1485_v32  ;;  %v770_v34 = vsel %vm446_vm7, %v763_v24, %v767_v20  ;;  %v772_v38 = vsel %vm446_vm7, %v767_v20, %v763_v24 }
 0x217   : > { %v774_v42 = vmul.f32 %v1615_v2, %v770_v34  ;;  %v775_v51 = vmul.f32 %v1620_v3, %v772_v38  ;;  %894 = vmatpush.bf16.msrb.mxu1 %v856_v40  ;;  %v779_v31 = vpack.c.bf16 %v777_v17, %v776_v16  ;;  %v842_v32 = vunpack.c.l.b16 %v1719_v7 }
 0x218   : > { %v743_v50 = vpack.c.bf16 %v741_v33, %v740_v28  ;;  %v698_v24 = vsel %vm368_vm3, %v1687_v37, %v1685_v35  ;;  %v853_v3 = vunpack.c.h.b16 %v760_v8  ;;  %v1186_v19 = vor.u32 %v1197_v63, %v1183_v0 }
 0x219   : > { %v778_v12 = vpack.c.bf16 %v775_v51, %v774_v42  ;;  %v864_v60 = vunpack.c.l.b16 %v779_v31  ;;  %v865_v61 = vunpack.c.h.b16 %v779_v31  ;;  %v833_v38 = vunpack.c.h.b16 %v724_v58 }
 0x21a   : > { %v844_v41 = vunpack.c.l.b16 %v743_v50  ;;  %v857_v17 = vpack.c.b16 %v855_v62, %v853_v3  ;;  %v845_v18 = vunpack.c.h.b16 %v743_v50  ;;  %v678_v42 = vsel %vm349_vm4, %v1689_v39, %v1691_v43 }
 0x21b   : > { %v862_v2 = vunpack.c.l.b16 %v778_v12  ;;  %v863_v57 = vunpack.c.h.b16 %v778_v12  ;;  %v683_v31 = vmul.f32 %v678_v42, %v1546_v49 }
 0x21c   : > { %v695_v55 = vpop.permute.xlu0 %694  ;;  %v846_v56 = vpack.c.b16 %v844_v41, %v842_v32 }
 0x21d   : > { %v715_v59 = vpop.permute.xlu1 %714  ;;  %v697_v9 = vsel %vm368_vm3, %v691_v47, %v695_v55  ;;  %v699_v5 = vsel %vm368_vm3, %v695_v55, %v691_v47  ;;  %v866_v15 = vpack.c.b16 %v864_v60, %v862_v2  ;;  %v867_v16 = vpack.c.b16 %v865_v61, %v863_v57 }
 0x21e   : > { %v717_v8 = vsel %vm389_vm2, %v1681_v26, %v715_v59  ;;  %v719_v1 = vsel %vm389_vm2, %v715_v59, %v1681_v26  ;;  %895 = vmatpush.bf16.msrb.mxu1 %v846_v56  ;;  %v696_v47 = vsel %vm368_vm3, %v1685_v35, %v1687_v37  ;;  %v702_v20 = vmul.f32 %v699_v5, %v1525_v29 }
 0x21f   : > { %v722_v6 = vmul.f32 %v717_v8, %v1501_v52  ;;  %v723_v14 = vmul.f32 %v719_v1, %v1504_v53  ;;  %v703_v23 = vmul.f32 %v697_v9, %v1528_v30  ;;  %915 = vmatpush.bf16.msra.mxu3 %v866_v15  ;;  %943 = vmatpush.bf16.msrb.mxu0 %v867_v16  ;;  %v843_v53 = vunpack.c.h.b16 %v1719_v7 }
 0x220   : > { %v700_v52 = vmul.f32 %v698_v24, %v1525_v29  ;;  %v701_v35 = vmul.f32 %v696_v47, %v1528_v30  ;;  %v832_v37 = vunpack.c.l.b16 %v724_v58  ;;  %v659_v29 = vpop.permute.xlu2 %658  ;;  %v680_v30 = vsel %vm349_vm4, %v1691_v43, %v1689_v39 }
 0x221   : > { %v725_v26 = vpack.c.bf16 %v723_v14, %v722_v6  ;;  %v847_v34 = vpack.c.b16 %v845_v18, %v843_v53  ;;  %v705_v40 = vpack.c.bf16 %v703_v23, %v702_v20  ;;  %v682_v36 = vmul.f32 %v680_v30, %v1543_v48 }
 0x222   : > { %1187 = vmatmul.msk.bf16.vlgmr.msra.gmra.mxu3 %vm568_vm8, %v1186_v19  ;;  %1188 = vmatmul.msk.bf16.vlgmr.msrb.gmra.mxu0 %vm568_vm8, %v1186_v19  ;;  %v704_v54 = vpack.c.bf16 %v701_v35, %v700_v52  ;;  %v661_v39 = vsel %vm330_vm5, %v1701_v13, %v659_v29  ;;  %v663_v43 = vsel %vm330_vm5, %v659_v29, %v1701_v13 }
 0x223   : > { %922 = vmatpush.bf16.msrb.mxu3 %v857_v17  ;;  %v834_v28 = vunpack.c.l.b16 %v725_v26  ;;  %v835_v33 = vunpack.c.h.b16 %v725_v26  ;;  %v814_v32 = vunpack.c.l.b16 %v705_v40  ;;  %v815_v2 = vunpack.c.h.b16 %v705_v40 }
 0x224   : > { %v635_v24 = vpop.permute.xlu0 %634  ;;  %v812_v55 = vunpack.c.l.b16 %v704_v54  ;;  %v813_v56 = vunpack.c.h.b16 %v704_v54  ;;  %v686_v57 = vpack.c.bf16 %v683_v31, %v682_v36  ;;  %v666_v60 = vmul.f32 %v663_v43, %v1562_v10 }
 0x225   : > { %v657_v50 = vpop.permute.xlu1 %656  ;;  %v836_v7 = vpack.c.b16 %v834_v28, %v832_v37  ;;  %v837_v51 = vpack.c.b16 %v835_v33, %v833_v38  ;;  %v667_v61 = vmul.f32 %v661_v39, %v1565_v4 }
 0x226   : > { %v660_v41 = vsel %vm330_vm5, %v1693_v44, %v657_v50  ;;  %v662_v12 = vsel %vm330_vm5, %v657_v50, %v1693_v44  ;;  %v816_v59 = vpack.c.b16 %v814_v32, %v812_v55  ;;  %v802_v1 = vunpack.c.l.b16 %v686_v57  ;;  %v1254_v32 = vld [vmem:[%s1372_s15] sm:$0xff] }
 0x227   : > { %923 = vmatpush.bf16.msrb.mxu3 %v847_v34  ;;  %896 = vmatpush.bf16.msrb.mxu1 %v836_v7  ;;  %v664_v3 = vmul.f32 %v662_v12, %v1562_v10  ;;  %v665_v44 = vmul.f32 %v660_v41, %v1565_v4  ;;  %v669_v8 = vpack.c.bf16 %v667_v61, %v666_v60  ;;  %v803_v6 = vunpack.c.h.b16 %v686_v57 }
 0x228   : > { %v639_v62 = vpop.permute.xlu2 %638 }
 0x229   : > { %v642_v10 = vsel %vm311_vm6, %v635_v24, %v639_v62  ;;  %v644_v4 = vsel %vm311_vm6, %v639_v62, %v635_v24  ;;  %v668_v9 = vpack.c.bf16 %v665_v44, %v664_v3  ;;  %v794_v26 = vunpack.c.l.b16 %v669_v8 }
 0x22a   : > { %v795_v35 = vunpack.c.h.b16 %v669_v8 }
 0x22b   : > { %924 = vmatpush.bf16.msrb.mxu3 %v837_v51  ;;  %897 = vmatpush.bf16.msrb.mxu1 %v1654_v21  ;;  %v792_v18 = vunpack.c.l.b16 %v668_v9  ;;  %v793_v19 = vunpack.c.h.b16 %v668_v9 }
 0x22c   : > { %v641_v15 = vpop.permute.xlu0 %640 }
 0x22d   : > { %v677_v58 = vpop.permute.xlu1 %676  ;;  %v796_v28 = vpack.c.b16 %v794_v26, %v792_v18  ;;  %v797_v33 = vpack.c.b16 %v795_v35, %v793_v19 }
 0x22e   : > { %v679_v21 = vsel %vm349_vm4, %v1683_v27, %v677_v58  ;;  %v681_v13 = vsel %vm349_vm4, %v677_v58, %v1683_v27  ;;  %v646_v27 = vmul.f32 %v644_v4, %v1582_v45  ;;  %v1255_v58 = vld [vmem:[%s1372_s15 + $0x8] sm:$0xff] }
 0x22f   : > { %925 = vmatpush.bf16.msrb.mxu3 %v1656_v22  ;;  %v684_v63 = vmul.f32 %v681_v13, %v1543_v48  ;;  %v685_v0 = vmul.f32 %v679_v21, %v1546_v49  ;;  %898 = vmatpush.bf16.msrb.mxu1 %v816_v59  ;;  %v817_v22 = vpack.c.b16 %v815_v2, %v813_v56  ;;  %v1256_v13 = vld [vmem:[%s1372_s15 + $0x10] sm:$0xff] }
 0x230   : > { %v647_v48 = vmul.f32 %v642_v10, %v1585_v46  ;;  %v880_v55 = vpop.permute.xlu2 %879 }
 0x231   : > { %v687_v5 = vpack.c.bf16 %v685_v0, %v684_v63 }
 0x232   : > { %v650_v52 = vpack.c.bf16 %v647_v48, %v646_v27  ;;  %v1257_v27 = vld [vmem:[%s1372_s15 + $0x18] sm:$0xff]  ;;  %s1864_s15 = scalar_lea.vmem [#allocation3], %s1369_s14  ;;  %s1199_s14 = sshll.u32 (%p1356_p5), %s1159_s24, 4 }
 0x233   : > { %926 = vmatpush.bf16.msrb.mxu3 %v817_v22  ;;  %v804_v14 = vunpack.c.l.b16 %v687_v5  ;;  %v805_v49 = vunpack.c.h.b16 %v687_v5  ;;  %s1079_s8 = scalar_lea.vmem (%p1356_p5), %s1902_s6, %s1199_s14 }
 0x234   : > { %v782_v34 = vunpack.c.l.b16 %v650_v52  ;;  %v783_v29 = vunpack.c.h.b16 %v650_v52 }
 0x235   : > { %v637_v16 = vpop.permute.xlu1 %636  ;;  %v806_v47 = vpack.c.b16 %v804_v14, %v802_v1  ;;  %v807_v17 = vpack.c.b16 %v805_v49, %v803_v6 }
 0x236   : > { %v643_v20 = vsel %vm311_vm6, %v637_v16, %v641_v15  ;;  %v645_v23 = vsel %vm311_vm6, %v641_v15, %v637_v16 }
 0x237   : > { %v648_v53 = vmul.f32 %v645_v23, %v1582_v45  ;;  %v649_v25 = vmul.f32 %v643_v20, %v1585_v46  ;;  %899 = vmatpush.bf16.msrb.mxu1 %v806_v47  ;;  %927 = vmatpush.bf16.msrb.mxu3 %v807_v17  ;;  %v1198_v45 = vld [vmem:[%s1900_s4 + $0x4] sm:$0xf0] }
 0x238   : > { %v1182_v7 = vor.u32 %v1198_v45, %v1181_v11 }
 0x239   : > { %v651_v37 = vpack.c.bf16 %v649_v25, %v648_v53 }
 0x23b   : > { %900 = vmatpush.bf16.msrb.mxu1 %v796_v28  ;;  %928 = vmatpush.bf16.msrb.mxu3 %v797_v33  ;;  %v784_v38 = vunpack.c.l.b16 %v651_v37  ;;  %v785_v40 = vunpack.c.h.b16 %v651_v37 }
 0x23d   : > { %v786_v46 = vpack.c.b16 %v784_v38, %v782_v34  ;;  %v787_v50 = vpack.c.b16 %v785_v40, %v783_v29 }
 0x23f   : > { %901 = vmatpush.bf16.msrb.mxu1 %v786_v46  ;;  %929 = vmatpush.bf16.msrb.mxu3 %v787_v50 }
 0x242   : > { %902 = vmatmul.bf16.vlgmr.msrb.gmra.mxu1 %v1182_v7  ;;  %930 = vmatmul.bf16.vlgmr.msrb.gmra.mxu3 %v1182_v7 }
 0x271   : > { %v875_v51 = vpop.permute.xlu1 %874 }
 0x29f   : > { %v945_v39 = vpop.f32.mrf.mxu0 }
 0x2a5   : > { %v917_v42 = vpop.f32.mrf.mxu3 }
 0x2a7   : > { %v947_v9 = vpop.f32.mrf.mxu0 }
 0x2ad   : > { %v919_v30 = vpop.f32.mrf.mxu3 }
 0x2bf   : > { %v903_v54 = vpop.f32.mrf.mxu1 }
 0x2c0   : > { %v904_v36 = vadd.f32 %v903_v54, %v875_v51 }
 0x2c2   : > { %v918_v31 = vadd.f32 %v917_v42, %v904_v36 }
 0x2c4   : > { %v1833_v41 = vadd.f32 %v1254_v32, %v918_v31 }
 0x2c5   : > { %v931_v12 = vpop.f32.mrf.mxu3 }
 0x2c6   : > { %v1836_v43 = vmul.f32 0.70710677, %v1833_v41  ;;  %v932_v24 = vadd.f32 %v931_v12, %v875_v51 }
 0x2c7   : > { %v905_v56 = vpop.f32.mrf.mxu1 }
 0x2c8   : > { %v962_v2 = vand.u32 2147483647, %v1836_v43  ;;  %v946_v57 = vadd.f32 %v945_v39, %v932_v24  ;;  %v906_v3 = vadd.f32 %v905_v56, %v880_v55 }
 0x2ca   : > { %v966_v44 = vmul.f32 0.3275911, %v962_v2  ;;  %v1840_v59 = vadd.f32 %v1255_v58, %v946_v57  ;;  %v920_v60 = vadd.f32 %v919_v30, %v906_v3  ;;  %v1014_v49 = vsub.f32 0.0, %v962_v2 }
 0x2cc   : > { %v970_v61 = vadd.f32 1.0, %v966_v44  ;;  %v1843_v21 = vmul.f32 0.70710677, %v1840_v59  ;;  %v1846_v62 = vadd.f32 %v1256_v13, %v920_v60  ;;  %v1018_v18 = vmul.f32 %v1014_v49, %v962_v2 }
 0x2cd   : > { %v933_v63 = vpop.f32.mrf.mxu3  ;;  %v1042_v60 = vand.u32 2147483648, %v1836_v43 }
 0x2ce   : > { %1238 = vrcp.f32 %v970_v61  ;;  %v963_v0 = vand.u32 2147483647, %v1843_v21  ;;  %v1850_v10 = vmul.f32 0.70710677, %v1846_v62  ;;  %v934_v4 = vadd.f32 %v933_v63, %v880_v55 }
 0x2cf   : > { %v1022_v35 = vmul.f32 1.442695, %v1018_v18 }
 0x2d0   : > { %v967_v22 = vmul.f32 0.3275911, %v963_v0  ;;  %v964_v5 = vand.u32 2147483647, %v1850_v10  ;;  %v948_v8 = vadd.f32 %v947_v9, %v934_v4  ;;  %v1015_v26 = vsub.f32 0.0, %v963_v0 }
 0x2d2   : > { %v971_v1 = vadd.f32 1.0, %v967_v22  ;;  %v968_v6 = vmul.f32 0.3275911, %v964_v5  ;;  %v1854_v48 = vadd.f32 %v1257_v27, %v948_v8  ;;  %v1016_v38 = vsub.f32 0.0, %v964_v5 }
 0x2d3   : > { %v1019_v29 = vmul.f32 %v1015_v26, %v963_v0 }
 0x2d4   : > { %v1239_v14 = vpop.eup %1238  ;;  %1240 = vrcp.f32 %v971_v1  ;;  %v972_v16 = vadd.f32 1.0, %v968_v6  ;;  %v1857_v47 = vmul.f32 0.70710677, %v1854_v48  ;;  %v1020_v42 = vmul.f32 %v1016_v38, %v964_v5 }
 0x2d5   : > { %v978_v15 = vmul.f32 1.0614054, %v1239_v14  ;;  %v1024_v30 = vmul.f32 1.442695, %v1019_v29  ;;  %v956_v29 = vmul.f32 0.5, %v1846_v62 }
 0x2d6   : > { %1242 = vrcp.f32 %v972_v16  ;;  %v965_v19 = vand.u32 2147483647, %v1857_v47  ;;  %v1026_v55 = vmul.f32 1.442695, %v1020_v42 }
 0x2d7   : > { %v982_v17 = vadd.f32 -1.4531521, %v978_v15 }
 0x2d8   : > { %v969_v52 = vmul.f32 0.3275911, %v965_v19  ;;  %v1017_v12 = vsub.f32 0.0, %v965_v19 }
 0x2d9   : > { %v986_v20 = vmul.f32 %v1239_v14, %v982_v17 }
 0x2da   : > { %v1241_v23 = vpop.eup %1240  ;;  %v973_v37 = vadd.f32 1.0, %v969_v52  ;;  %v1021_v13 = vmul.f32 %v1017_v12, %v965_v19 }
 0x2db   : > { %v990_v53 = vadd.f32 1.4214138, %v986_v20  ;;  %v979_v25 = vmul.f32 1.0614054, %v1241_v23  ;;  %v1043_v20 = vand.u32 2147483648, %v1843_v21 }
 0x2dc   : > { %v1243_v28 = vpop.eup %1242  ;;  %1244 = vrcp.f32 %v973_v37  ;;  %v1028_v27 = vmul.f32 1.442695, %v1021_v13 }
 0x2dd   : > { %v994_v33 = vmul.f32 %v1239_v14, %v990_v53  ;;  %v983_v34 = vadd.f32 -1.4531521, %v979_v25  ;;  %v980_v40 = vmul.f32 1.0614054, %v1243_v28  ;;  %1246 = vpow2.f32 %v1022_v35 }
 0x2de   : > { %1248 = vpow2.f32 %v1024_v30  ;;  %v1044_v25 = vand.u32 2147483648, %v1850_v10  ;;  %v955_v35 = vmul.f32 0.5, %v1840_v59  ;;  %v957_v59 = vmul.f32 0.5, %v1854_v48 }
 0x2df   : > { %v998_v11 = vadd.f32 -0.28449672, %v994_v33  ;;  %v987_v45 = vmul.f32 %v1241_v23, %v983_v34  ;;  %v984_v46 = vadd.f32 -1.4531521, %v980_v40  ;;  %1250 = vpow2.f32 %v1026_v55 }
 0x2e0   : > { %1252 = vpow2.f32 %v1028_v27 }
 0x2e1   : > { %v1002_v50 = vmul.f32 %v1239_v14, %v998_v11  ;;  %v991_v7 = vadd.f32 1.4214138, %v987_v45  ;;  %v988_v51 = vmul.f32 %v1243_v28, %v984_v46 }
 0x2e2   : > { %v1245_v31 = vpop.eup %1244 }
 0x2e3   : > { %v1006_v54 = vadd.f32 0.2548296, %v1002_v50  ;;  %v995_v36 = vmul.f32 %v1241_v23, %v991_v7  ;;  %v992_v32 = vadd.f32 1.4214138, %v988_v51  ;;  %v981_v56 = vmul.f32 1.0614054, %v1245_v31  ;;  %v1247_v2 = vpop.eup %1246 }
 0x2e4   : > { %v1249_v1 = vpop.eup %1248  ;;  %v1045_v50 = vand.u32 2147483648, %v1857_v47 }
 0x2e5   : > { %v1010_v39 = vmul.f32 %v1239_v14, %v1006_v54  ;;  %v999_v24 = vadd.f32 -0.28449672, %v995_v36  ;;  %v996_v57 = vmul.f32 %v1243_v28, %v992_v32  ;;  %v985_v58 = vadd.f32 -1.4531521, %v981_v56  ;;  %v1251_v17 = vpop.eup %1250 }
 0x2e6   : > { %v954_v14 = vmul.f32 0.5, %v1833_v41  ;;  %v1253_v38 = vpop.eup %1252 }
 0x2e7   : > { %v1030_v3 = vmul.f32 %v1247_v2, %v1010_v39  ;;  %v1003_v44 = vmul.f32 %v1241_v23, %v999_v24  ;;  %v1000_v61 = vadd.f32 -0.28449672, %v996_v57  ;;  %v989_v4 = vmul.f32 %v1245_v31, %v985_v58 }
 0x2e9   : > { %v1034_v63 = vsub.f32 1.0, %v1030_v3  ;;  %v1007_v0 = vadd.f32 0.2548296, %v1003_v44  ;;  %v1004_v22 = vmul.f32 %v1243_v28, %v1000_v61  ;;  %v993_v8 = vadd.f32 1.4214138, %v989_v4 }
 0x2eb   : > { %v1050_v9 = vor.u32 %v1042_v60, %v1034_v63  ;;  %v1011_v5 = vmul.f32 %v1241_v23, %v1007_v0  ;;  %v1008_v6 = vadd.f32 0.2548296, %v1004_v22  ;;  %v997_v16 = vmul.f32 %v1245_v31, %v993_v8 }
 0x2ed   : > { %v1058_v49 = vadd.f32 1.0, %v1050_v9  ;;  %v1031_v15 = vmul.f32 %v1249_v1, %v1011_v5  ;;  %v1012_v43 = vmul.f32 %v1243_v28, %v1008_v6  ;;  %v1001_v26 = vadd.f32 -0.28449672, %v997_v16 }
 0x2ef   : > { %v1062_v18 = vmul.f32 %v1058_v49, %v954_v14  ;;  %v1035_v19 = vsub.f32 1.0, %v1031_v15  ;;  %v1032_v52 = vmul.f32 %v1251_v17, %v1012_v43  ;;  %v1005_v53 = vmul.f32 %v1245_v31, %v1001_v26 }
 0x2f1   : > { %1066 = vst [vmem:[%s1864_s15] sm:$0xff] %v1062_v18  ;;  %v1051_v23 = vor.u32 %v1043_v20, %v1035_v19  ;;  %v1036_v41 = vsub.f32 1.0, %v1032_v52  ;;  %v1009_v28 = vadd.f32 0.2548296, %v1005_v53 }
 0x2f3   : > { %v1059_v37 = vadd.f32 1.0, %v1051_v23  ;;  %v1052_v33 = vor.u32 %v1044_v25, %v1036_v41  ;;  %v1013_v34 = vmul.f32 %v1245_v31, %v1009_v28 }
 0x2f5   : > { %v1063_v21 = vmul.f32 %v1059_v37, %v955_v35  ;;  %v1060_v40 = vadd.f32 1.0, %v1052_v33  ;;  %v1033_v11 = vmul.f32 %v1253_v38, %v1013_v34 }
 0x2f7   : > { %1067 = vst [vmem:[%s1864_s15 + $0x8] sm:$0xff] %v1063_v21  ;;  %v1064_v45 = vmul.f32 %v1060_v40, %v956_v29  ;;  %v1037_v46 = vsub.f32 1.0, %v1033_v11 }
 0x2f8   : > { %v1092_v62 = vld [vmem:[%s1864_s15] sm:$0xff] (%p1356_p5) }
 0x2f9   : > { %1068 = vst [vmem:[%s1864_s15 + $0x10] sm:$0xff] %v1064_v45  ;;  %v1053_v10 = vor.u32 %v1045_v50, %v1037_v46 }
 0x2fa   : > { %1093 = vst [vmem:[%s1079_s8] sm:$0xff] (%p1356_p5), %v1092_v62 }
 0x2fb   : > { %v1061_v7 = vadd.f32 1.0, %v1053_v10  ;;  %1076 = sbr.rel (!%p1356_p5) target bundleno = 776 (0x308), region = 71 }
 0x2fd   : > { %v1065_v42 = vmul.f32 %v1061_v7, %v957_v59 }
 0x2fe   : > { %v1094_v30 = vld [vmem:[%s1864_s15 + $0x8] sm:$0xff] (%p1356_p5) }
 0x2ff   : > { %1069 = vst [vmem:[%s1864_s15 + $0x18] sm:$0xff] %v1065_v42 }
 0x300   : > { %v1096_v48 = vld [vmem:[%s1864_s15 + $0x10] sm:$0xff]  ;;  %1095 = vst [vmem:[%s1079_s8 + $0x8] sm:$0xff] %v1094_v30 }
 0x301   : > { %1097 = vst [vmem:[%s1079_s8 + $0x20] sm:$0xff] %v1096_v48 }
 0x306   : > { %v1098_v47 = vld [vmem:[%s1864_s15 + $0x18] sm:$0xff] }
 0x307   : > { %1099 = vst [vmem:[%s1079_s8 + $0x28] sm:$0xff] %v1098_v47 }
 0x308 PF: > { %p13_p10 = scmp.ge.s32.totalorder %s1343_s25, 4   ;;  %s1904_s21 = smov %s1276_s22 }
 0x309   : > { %s1905_s22 = smov %s1354_s28  ;;  %s1906_s23 = smov %s1343_s25 }
 0x30a   :  { %15 = sbr.rel (!%p13_p10) target bundleno = 2 (0x2), region = 125 }

</bundles_post_ra>
